<compile_context>
chip_gen: v6e
topology: v6e:2x2x1
jax: 0.10.0
libtpu: 0.0.40
codegen_flags: <defaults>
</compile_context>

<pallas_src>
import functools
import numpy as np
import jax
import jax.numpy as jnp
from jax.experimental import pallas as pl
from jax.experimental.pallas import tpu as pltpu

LN_EPS = 1e-5
_INV_SQRT2 = 0.7071067811865476
_MiB = 1024 * 1024


# ----------------------------------------------------------------------------
# Generation-aware sizing
# ----------------------------------------------------------------------------
@functools.lru_cache(maxsize=None)
def _chip_config():
    """VMEM budget + grid-step preference derived from the attached TPU generation."""
    kind = ""
    try:
        kind = jax.devices()[0].device_kind.lower()
    except Exception:
        pass
    if "v7" in kind or "7x" in kind:
        # v7x: 64 MiB physical VMEM per TC, 2 TCs/chip -> keep limit <= ~48 MiB,
        # prefer parallel grids with an even number of steps.
        return dict(vmem_limit=48 * _MiB, tile_budget=36 * _MiB, prefer_steps_of=2)
    if "v4" in kind or "v5p" in kind:
        # megacore (2 TCs), 128 MiB VMEM.
        return dict(vmem_limit=64 * _MiB, tile_budget=48 * _MiB, prefer_steps_of=2)
    if "v5" in kind or "v6" in kind:
        # v5e / v6e: single TC, 128 MiB physical VMEM -> big tiles, fewest grid steps.
        return dict(vmem_limit=64 * _MiB, tile_budget=48 * _MiB, prefer_steps_of=1)
    # unknown / older chips: conservative.
    return dict(vmem_limit=32 * _MiB, tile_budget=24 * _MiB, prefer_steps_of=1)


def _pick_row_tile(M, max_rows, prefer_steps_of=1):
    """Largest multiple-of-8 divisor of M (or M itself) fitting the row budget.
    On 2-TC chips prefer a tile giving an even number of grid steps."""
    cands = [d for d in range(8, M, 8) if M % d == 0 and d <= max_rows]
    if M <= max_rows or not cands:
        cands.append(M)                      # full-extent block is always legal
    if prefer_steps_of > 1:
        pref = [d for d in cands
                if (M // d) % prefer_steps_of == 0 and M // d >= prefer_steps_of]
        if pref:
            return max(pref)
    return max(cands)


def _pick_batch_block(B, rows_per_batch, max_rows, prefer_steps_of=1):
    """Batches of windows per attention grid step, budget-bounded; even #steps on 2-TC."""
    divs = [d for d in range(1, B + 1) if B % d == 0]
    fits = [d for d in divs if d * rows_per_batch <= max_rows] or [1]
    if prefer_steps_of > 1:
        pref = [d for d in fits
                if (B // d) % prefer_steps_of == 0 and B // d >= prefer_steps_of]
        if pref:
            return max(pref)
    return max(fits)


# ----------------------------------------------------------------------------
# Pallas kernels
# ----------------------------------------------------------------------------
def layernorm_pallas(x2d, gamma, beta):
    """LayerNorm over the last dim.  x2d: (M, C).  Row-tiled, parallel grid.
    Only used for the very first block; later LN1s are fused into the MLP kernel."""
    M, C = x2d.shape
    cfg = _chip_config()
    per_row = 24 * C                                    # dbl-buffered in/out + f32 temps
    max_rows = max(8, int(cfg["tile_budget"] * 0.75 // per_row))
    tm = _pick_row_tile(M, max_rows, cfg["prefer_steps_of"])

    def kernel(x_ref, g_ref, b_ref, o_ref):
        xv = x_ref[...].astype(jnp.float32)
        mean = jnp.mean(xv, axis=-1, keepdims=True)
        var = jnp.mean(jnp.square(xv - mean), axis=-1, keepdims=True)
        y = (xv - mean) * jax.lax.rsqrt(var + LN_EPS)
        o_ref[...] = (y * g_ref[...] + b_ref[...]).astype(o_ref.dtype)

    return pl.pallas_call(
        kernel,
        out_shape=jax.ShapeDtypeStruct((M, C), x2d.dtype),
        grid=(M // tm,),
        in_specs=[
            pl.BlockSpec((tm, C), lambda i: (i, 0)),
            pl.BlockSpec((1, C), lambda i: (0, 0)),
            pl.BlockSpec((1, C), lambda i: (0, 0)),
        ],
        out_specs=pl.BlockSpec((tm, C), lambda i: (i, 0)),
        compiler_params=pltpu.CompilerParams(
            dimension_semantics=("parallel",),
            vmem_limit_bytes=cfg["vmem_limit"]),
    )(x2d, gamma.reshape(1, C), beta.reshape(1, C))


def mlp_residual_block_pallas(shortcut2d, branch2d, gamma, beta, w1, b1, w2, b2,
                              next_ln=None):
    """Fused: x = shortcut + branch;  out = x + fc2(gelu(fc1(LN(x)))).
    If next_ln = (g1_next, b1_next) is given, also emits LN(out) with those params
    (the next block's LN1), saving one full HBM read+write per block."""
    M, C = shortcut2d.shape
    Hd = w1.shape[1]
    has_next = next_ln is not None
    cfg = _chip_config()

    # budget-derived row tile; account for double-buffered bf16 MLP weights
    resident = (w1.size + w2.size) * 2 * 2 + (Hd + 6 * C) * 4 * 2
    n_out = 2 if has_next else 1
    per_row = (2 + n_out) * C * 4 * 2 + (4 * C + Hd) * 4
    max_rows = max(8, int((cfg["tile_budget"] * 0.75 - resident) // per_row))
    tm = _pick_row_tile(M, max_rows, cfg["prefer_steps_of"])

    w1_b = w1.astype(jnp.bfloat16)
    w2_b = w2.astype(jnp.bfloat16)

    def kernel(*refs):
        if has_next:
            (sc_ref, br_ref, g_ref, bt_ref, w1_ref, b1_ref, w2_ref, b2_ref,
             g1n_ref, b1n_ref, o_ref, oln_ref) = refs
        else:
            (sc_ref, br_ref, g_ref, bt_ref, w1_ref, b1_ref, w2_ref, b2_ref,
             o_ref) = refs
        x = sc_ref[...].astype(jnp.float32) + br_ref[...].astype(jnp.float32)
        mean = jnp.mean(x, axis=-1, keepdims=True)
        var = jnp.mean(jnp.square(x - mean), axis=-1, keepdims=True)
        y = (x - mean) * jax.lax.rsqrt(var + LN_EPS) * g_ref[...] + bt_ref[...]
        h = jnp.dot(y.astype(jnp.bfloat16), w1_ref[...],
                    preferred_element_type=jnp.float32) + b1_ref[...]
        h = 0.5 * h * (1.0 + jax.lax.erf(h * _INV_SQRT2))        # exact (erf) GELU
        out = jnp.dot(h.astype(jnp.bfloat16), w2_ref[...],
                      preferred_element_type=jnp.float32) + b2_ref[...]
        res = x + out
        o_ref[...] = res.astype(o_ref.dtype)
        if has_next:                      # fused LN1 of the NEXT block (rows already hot)
            m2 = jnp.mean(res, axis=-1, keepdims=True)
            v2 = jnp.mean(jnp.square(res - m2), axis=-1, keepdims=True)
            yn = (res - m2) * jax.lax.rsqrt(v2 + LN_EPS)
            oln_ref[...] = (yn * g1n_ref[...] + b1n_ref[...]).astype(oln_ref.dtype)

    in_specs = [
        pl.BlockSpec((tm, C), lambda i: (i, 0)),
        pl.BlockSpec((tm, C), lambda i: (i, 0)),
        pl.BlockSpec((1, C), lambda i: (0, 0)),
        pl.BlockSpec((1, C), lambda i: (0, 0)),
        pl.BlockSpec((C, Hd), lambda i: (0, 0)),
        pl.BlockSpec((1, Hd), lambda i: (0, 0)),
        pl.BlockSpec((Hd, C), lambda i: (0, 0)),
        pl.BlockSpec((1, C), lambda i: (0, 0)),
    ]
    args = [shortcut2d, branch2d, gamma.reshape(1, C), beta.reshape(1, C),
            w1_b, b1.reshape(1, Hd), w2_b, b2.reshape(1, C)]
    if has_next:
        g1n, b1n = next_ln
        in_specs += [pl.BlockSpec((1, C), lambda i: (0, 0)),
                     pl.BlockSpec((1, C), lambda i: (0, 0))]
        args += [g1n.reshape(1, C), b1n.reshape(1, C)]
        out_shape = (jax.ShapeDtypeStruct((M, C), shortcut2d.dtype),
                     jax.ShapeDtypeStruct((M, C), shortcut2d.dtype))
        out_specs = (pl.BlockSpec((tm, C), lambda i: (i, 0)),
                     pl.BlockSpec((tm, C), lambda i: (i, 0)))
    else:
        out_shape = jax.ShapeDtypeStruct((M, C), shortcut2d.dtype)
        out_specs = pl.BlockSpec((tm, C), lambda i: (i, 0))

    # TODO(synk): with C < 128 the (tm, C) stores lower to masked vst; a lane-dense
    # (M/k, k*C) output view would help, but production C >= 128 makes it moot.
    return pl.pallas_call(
        kernel, out_shape=out_shape, grid=(M // tm,),
        in_specs=in_specs, out_specs=out_specs,
        compiler_params=pltpu.CompilerParams(
            dimension_semantics=("parallel",),
            vmem_limit_bytes=cfg["vmem_limit"]),
    )(*args)


def window_attention_pallas(xw, rel_bias, mask, wqkv, bqkv, wproj, bproj,
                            num_heads, scale, nW):
    """Batched-window multi-head self attention.

    xw:       (B*nW, N, C)   windows, batch-major (from window_partition)
    rel_bias: (heads, N, N)  relative-position bias, VMEM-resident
    mask:     (nW, N, N)     shift mask (None for unshifted blocks), VMEM-resident
    """
    Bw, N, C = xw.shape
    assert Bw % nW == 0 and C % num_heads == 0
    B = Bw // nW
    hd = C // num_heads
    has_mask = mask is not None
    cfg = _chip_config()

    # budget-derived number of batches per grid step
    resident = (wqkv.size + wproj.size) * 2 * 2 + rel_bias.size * 4 * 2
    if has_mask:
        resident += mask.size * 4 * 2
    per_row = 32 * C + 8 * N
    max_rows = max(8, int((cfg["tile_budget"] * 0.75 - resident) // per_row))
    B_BLK = _pick_batch_block(B, nW * N, max_rows, cfg["prefer_steps_of"])
    if (B_BLK * nW * N) % 8 != 0 and B_BLK != B:
        B_BLK = B                         # full-extent block: no (8,128) constraint
    rows = B_BLK * nW * N                 # tokens per grid step
    BW = B_BLK * nW                       # windows per grid step

    x2d = xw.reshape(Bw * N, C)
    # Fold the attention scale into the Q third of the QKV projection (compile-time
    # constant fold; removes the per-head VPU multiply inside the kernel).
    col_scale = jnp.concatenate([jnp.full((C,), scale, jnp.float32),
                                 jnp.ones((2 * C,), jnp.float32)])
    wqkv_b = (wqkv * col_scale[None, :]).astype(jnp.bfloat16)
    bqkv_s = (bqkv * col_scale).reshape(1, 3 * C)
    wproj_b = wproj.astype(jnp.bfloat16)

    def kernel(*refs):
        if has_mask:
            (x_ref, bias_ref, mask_ref, wqkv_ref, bqkv_ref, wproj_ref, bproj_ref,
             o_ref, merged_ref) = refs
        else:
            (x_ref, bias_ref, wqkv_ref, bqkv_ref, wproj_ref, bproj_ref,
             o_ref, merged_ref) = refs
            mask_ref = None
        # One bf16 QKV matmul for every token of every window in the block.
        qkv = jnp.dot(x_ref[...].astype(jnp.bfloat16), wqkv_ref[...],
                      preferred_element_type=jnp.float32) + bqkv_ref[...]   # (rows, 3C)
        # Per-head attention with hd-wide Q/K/V slices.  Each head's (rows, hd) output
        # is written into its channel slot of the VMEM scratch, so head merging is a
        # set of cheap slot stores and the output projection is one C-wide matmul.
        for h in range(num_heads):        # short static loop (num_heads)
            qh = qkv[:, h * hd:(h + 1) * hd].reshape(BW, N, hd)
            kh = qkv[:, C + h * hd:C + (h + 1) * hd].reshape(BW, N, hd)
            vh = qkv[:, 2 * C + h * hd:2 * C + (h + 1) * hd].reshape(BW, N, hd)
            s = jnp.einsum("bnd,bmd->bnm",
                           qh.astype(jnp.bfloat16), kh.astype(jnp.bfloat16),
                           preferred_element_type=jnp.float32)              # (BW, N, N)
            s = s + bias_ref[h][None]                                        # rel-pos bias
            if has_mask:
                s = (s.reshape(B_BLK, nW, N, N) + mask_ref[...][None]).reshape(BW, N, N)
            s = s - jnp.max(s, axis=-1, keepdims=True)
            p = jnp.exp(s)
            p = p * pl.reciprocal(jnp.sum(p, axis=-1, keepdims=True), approx=True)
            oh = jnp.einsum("bnm,bmd->bnd",
                            p.astype(jnp.bfloat16), vh.astype(jnp.bfloat16),
                            preferred_element_type=jnp.float32)             # (BW, N, hd)
            merged_ref[:, h * hd:(h + 1) * hd] = oh.reshape(rows, hd)
        out = jnp.dot(merged_ref[...].astype(jnp.bfloat16), wproj_ref[...],
                      preferred_element_type=jnp.float32) + bproj_ref[...]
        o_ref[...] = out.astype(o_ref.dtype)

    in_specs = [pl.BlockSpec((rows, C), lambda b: (b, 0)),
                pl.BlockSpec((num_heads, N, N), lambda b: (0, 0, 0))]       # resident
    args = [x2d, rel_bias]
    if has_mask:
        in_specs.append(pl.BlockSpec((nW, N, N), lambda b: (0, 0, 0)))      # resident
        args.append(mask)
    in_specs += [pl.BlockSpec((C, 3 * C), lambda b: (0, 0)),
                 pl.BlockSpec((1, 3 * C), lambda b: (0, 0)),
                 pl.BlockSpec((C, C), lambda b: (0, 0)),
                 pl.BlockSpec((1, C), lambda b: (0, 0))]
    args += [wqkv_b, bqkv_s, wproj_b, bproj.reshape(1, C)]

    out = pl.pallas_call(
        kernel,
        out_shape=jax.ShapeDtypeStruct((Bw * N, C), xw.dtype),
        grid=(B // B_BLK,),
        in_specs=in_specs,
        out_specs=pl.BlockSpec((rows, C), lambda b: (b, 0)),
        scratch_shapes=[pltpu.VMEM((rows, C), jnp.float32)],
        compiler_params=pltpu.CompilerParams(
            dimension_semantics=("parallel",),
            vmem_limit_bytes=cfg["vmem_limit"]),
    )(*args)
    return out.reshape(Bw, N, C)


# ----------------------------------------------------------------------------
# Glue: window partition / reverse / mask / relative position index
# (reproduced exactly from the PyTorch code, including its quirks)
# ----------------------------------------------------------------------------
def window_partition(x, window_size):
    B, T, H, W, C = x.shape
    Tw, Hw, Ww = window_size
    x = x.reshape(B, T // Tw, Tw, H // Hw, Hw, W // Ww, Ww, C)
    x = jnp.transpose(x, (0, 1, 3, 5, 2, 4, 6, 7))
    return x.reshape(-1, Tw, Hw, Ww, C)


def window_reverse(windows, window_size, T, H, W):
    Tw, Hw, Ww = window_size
    num_windows = T * H * W // (Hw * Ww * Tw)
    B = windows.shape[0] // num_windows
    C = windows.shape[-1]
    x = windows.reshape(B, T // Tw, H // Hw, W // Ww, Tw, Hw, Ww, C)
    # NOTE: same (non-inverse) permutation as the reference code.
    x = jnp.transpose(x, (0, 1, 2, 4, 3, 5, 6, 7))
    return x.reshape(B, T, H, W, C)


def relative_position_index_np(window_size):
    wt, wh, ww = window_size
    coords = np.stack(np.meshgrid(np.arange(wt), np.arange(wh), np.arange(ww),
                                  indexing="ij"))
    coords_flatten = coords.reshape(3, -1)
    rel = coords_flatten[:, :, None] - coords_flatten[:, None, :]
    rel = np.ascontiguousarray(rel.transpose(1, 2, 0)).astype(np.int64)
    rel[:, :, 0] += wt - 1
    rel[:, :, 1] += wh - 1
    rel[:, :, 2] += ww - 1
    rel[:, :, 0] *= (2 * wh - 1) * (2 * ww - 1)   # same as reference (dim 1 not scaled)
    return rel.sum(-1)                            # (N, N)


def create_mask(T, H, W, window_size):
    wt, wh, ww = window_size
    Tp = int(np.ceil(T / wt)) * wt
    Hp = int(np.ceil(H / wh)) * wh
    Wp = int(np.ceil(W / ww)) * ww
    img_mask = np.zeros((1, Tp, Hp, Wp, 1), np.float32)
    t_slices = (slice(0, -wt), slice(-wt, -wt), slice(-wt, None))
    h_slices = (slice(0, -wh), slice(-wh, -wh), slice(-wh, None))
    w_slices = (slice(0, -ww), slice(-ww, -ww), slice(-ww, None))
    cnt = 0
    for t in t_slices:
        for h in h_slices:
            for w in w_slices:
                img_mask[:, t, h, w, :] = cnt
                cnt += 1
    mask_windows = np.asarray(window_partition(jnp.asarray(img_mask), window_size))
    mask_windows = mask_windows.reshape(-1, wt * wh * ww)
    attn_mask = mask_windows[:, None, :] - mask_windows[:, :, None]
    attn_mask = np.where(attn_mask != 0, -100.0, 0.0).astype(np.float32)
    return jnp.asarray(attn_mask)                 # (nW, N, N)


# ----------------------------------------------------------------------------
# Swin block + BasicLayer forward (glue around the Pallas kernels)
# ----------------------------------------------------------------------------
def swin_block_forward(x, xn, p, T, H, W, window_size, shift_size, attn_mask,
                       num_heads, next_ln):
    """x: residual stream (B,L,C); xn: LN1(x) already computed (standalone or fused).
    Returns (block output, LN1-of-output with next block's params or None)."""
    B, L, C = x.shape
    assert L == T * H * W
    wt, wh, ww = window_size
    N = wt * wh * ww
    scale = (C // num_heads) ** (-0.5)
    shortcut = x

    # reshape quirk of the reference code: (B, L, C) -> (B, C, H, W, T)
    xr = xn.reshape(B, C, H, W, T)
    pad_t = (wt - T % wt) % wt
    pad_h = (wh - H % wh) % wh
    pad_w = (ww - W % ww) % ww
    xr = jnp.pad(xr, ((0, 0), (0, 0), (0, pad_h), (0, pad_w), (0, pad_t)))
    xr = jnp.transpose(xr, (0, 4, 2, 3, 1))            # (B, Tp, Hp, Wp, C)
    _, Tp, Hp, Wp, _ = xr.shape
    nW = (Tp // wt) * (Hp // wh) * (Wp // ww)

    shifted = any(s > 0 for s in shift_size)
    if shifted:
        shifted_x = jnp.roll(xr, shift=(-shift_size[0], -shift_size[1], -shift_size[2]),
                             axis=(1, 2, 3))
        mask = attn_mask                                # (nW, N, N)
    else:
        shifted_x = xr
        mask = None                                     # reference drops the mask here

    # TODO(synk): pad/roll/window_partition/window_reverse stay as XLA glue; a
    # scalar-prefetched gather index_map feeding the attention kernel directly would
    # remove 3-4 extra HBM passes per block but is out of scope here.
    x_windows = window_partition(shifted_x, window_size).reshape(-1, N, C)

    attn_windows = window_attention_pallas(x_windows, p["rel_bias"], mask,
                                           p["wqkv"], p["bqkv"], p["wproj"], p["bproj"],
                                           num_heads, scale, nW)

    attn_windows = attn_windows.reshape(-1, wt, wh, ww, C)
    shifted_x = window_reverse(attn_windows, window_size, Tp, Hp, Wp)

    if shifted:
        xo = jnp.roll(shifted_x, shift=(shift_size[0], shift_size[1], shift_size[2]),
                      axis=(1, 2, 3))
    else:
        xo = shifted_x
    if pad_t > 0 or pad_h > 0 or pad_w > 0:
        xo = xo[:, :T, :H, :W, :]
    branch = xo.reshape(B, L, C)

    # Fused: residual-1, LN2, MLP (erf GELU), residual-2 [+ LN1 of next block].
    outs = mlp_residual_block_pallas(
        shortcut.reshape(B * L, C), branch.reshape(B * L, C),
        p["g2"], p["b2"], p["w1"], p["bfc1"], p["w2"], p["bfc2"], next_ln=next_ln)
    if next_ln is not None:
        out, out_ln = outs
        return out.reshape(B, L, C), out_ln.reshape(B, L, C)
    return outs.reshape(B, L, C), None


def basic_layer_forward(x, params_list, T, H, W, window_size, num_heads):
    wt, wh, ww = window_size
    shift = (wt // 2, wh // 2, ww // 2)
    attn_mask = create_mask(T, H, W, window_size)
    B, L, C = x.shape
    depth = len(params_list)

    # LN1 of the first block runs standalone; every subsequent LN1 is emitted by the
    # previous block's fused MLP kernel (one fewer full HBM pass per block).
    xn = layernorm_pallas(x.reshape(B * L, C),
                          params_list[0]["g1"], params_list[0]["b1"]).reshape(B, L, C)

    for i, p in enumerate(params_list):
        shift_size = (0, 0, 0) if i % 2 == 0 else shift
        nxt = params_list[i + 1] if i + 1 < depth else None
        next_ln = (nxt["g1"], nxt["b1"]) if nxt is not None else None
        x, xn = swin_block_forward(x, xn, p, T, H, W, window_size, shift_size,
                                   attn_mask, num_heads, next_ln)
    # downsample is None in this configuration
    return x, T, H, W


# ----------------------------------------------------------------------------
# Deterministic parameter init
# ----------------------------------------------------------------------------
def init_block_params(key, dim, num_heads, window_size, mlp_ratio=4.0):
    wt, wh, ww = window_size
    N = wt * wh * ww
    hidden = int(dim * mlp_ratio)
    table_size = (2 * wt - 1) * (2 * wh - 1) * (2 * ww - 1)
    ks = jax.random.split(key, 9)

    rel_table = 0.02 * jax.random.normal(ks[0], (table_size, num_heads), jnp.float32)
    rel_index = relative_position_index_np(window_size)                 # (N, N) int
    rel_bias = rel_table[rel_index.reshape(-1)].reshape(N, N, num_heads)
    rel_bias = jnp.transpose(rel_bias, (2, 0, 1))                       # (heads, N, N)

    return dict(
        g1=jnp.ones((dim,), jnp.float32), b1=jnp.zeros((dim,), jnp.float32),
        wqkv=0.05 * jax.random.normal(ks[1], (dim, 3 * dim), jnp.float32),
        bqkv=0.02 * jax.random.normal(ks[2], (3 * dim,), jnp.float32),
        wproj=0.05 * jax.random.normal(ks[3], (dim, dim), jnp.float32),
        bproj=0.02 * jax.random.normal(ks[4], (dim,), jnp.float32),
        rel_bias=rel_bias,
        g2=jnp.ones((dim,), jnp.float32), b2=jnp.zeros((dim,), jnp.float32),
        w1=0.05 * jax.random.normal(ks[5], (dim, hidden), jnp.float32),
        bfc1=0.02 * jax.random.normal(ks[6], (hidden,), jnp.float32),
        w2=0.05 * jax.random.normal(ks[7], (hidden, dim), jnp.float32),
        bfc2=0.02 * jax.random.normal(ks[8], (dim,), jnp.float32),
    )


# ----------------------------------------------------------------------------
if __name__ == "__main__":
    key = jax.random.PRNGKey(0)
    B, C = 2, 32
    T, H, W = 4, 4, 4
    window_size = (4, 2, 2)
    num_heads = 4
    depth = 2                      # even block: no shift; odd block: shifted window
    L = T * H * W

    kx, kp = jax.random.split(key)
    x = jax.random.normal(kx, (B, L, C), jnp.float32)
    params_list = [init_block_params(k, C, num_heads, window_size)
                   for k in jax.random.split(kp, depth)]

    out, To, Ho, Wo = basic_layer_forward(x, params_list, T, H, W,
                                          window_size, num_heads)
    jax.block_until_ready(out)
    assert out.shape == (B, L, C)
    assert jnp.all(jnp.isfinite(out))
    print("KERNEL_OK")
</pallas_src>

<mosaic_0001>
module attributes {stable_mosaic.version = 11 : i64} {
  func.func @kernel(%arg0: i32, %arg1: memref<128x32xf32, #tpu.memory_space<vmem>>, %arg2: memref<1x32xf32, #tpu.memory_space<vmem>>, %arg3: memref<1x32xf32, #tpu.memory_space<vmem>>, %arg4: memref<128x32xf32, #tpu.memory_space<vmem>>) attributes {dimension_semantics = [#tpu.dimension_semantics<parallel>], iteration_bounds = array<i64: 1>, scalar_prefetch = 0 : i64, scratch_operands = 0 : i64, tpu.core_type = #tpu.core_type<tc>, window_params = [{transform_indices = @transform_0, window_bounds = array<i64: 128, 32>}, {pipeline_mode = #tpu.pipeline_mode<synchronous>, transform_indices = @transform_1, window_bounds = array<i64: 1, 32>}, {pipeline_mode = #tpu.pipeline_mode<synchronous>, transform_indices = @transform_2, window_bounds = array<i64: 1, 32>}, {transform_indices = @transform_3, window_bounds = array<i64: 128, 32>}]} {
    %c0 = arith.constant 0 : index
    %c0_0 = arith.constant 0 : index
    %0 = vector.load %arg1[%c0, %c0_0] : memref<128x32xf32, #tpu.memory_space<vmem>>, vector<128x32xf32>
    %cst = arith.constant dense<0.000000e+00> : vector<128xf32>
    %1 = vector.multi_reduction <add>, %0, %cst [1] : vector<128x32xf32> to vector<128xf32>
    %2 = vector.shape_cast %1 : vector<128xf32> to vector<128x1xf32>
    %cst_1 = arith.constant 3.200000e+01 : f32
    %3 = vector.broadcast %cst_1 : f32 to vector<128x1xf32>
    %4 = arith.divf %2, %3 : vector<128x1xf32>
    %5 = vector.broadcast %4 : vector<128x1xf32> to vector<128x32xf32>
    %6 = arith.subf %0, %5 : vector<128x32xf32>
    %7 = arith.mulf %6, %6 : vector<128x32xf32>
    %cst_2 = arith.constant dense<0.000000e+00> : vector<128xf32>
    %8 = vector.multi_reduction <add>, %7, %cst_2 [1] : vector<128x32xf32> to vector<128xf32>
    %9 = vector.shape_cast %8 : vector<128xf32> to vector<128x1xf32>
    %cst_3 = arith.constant 3.200000e+01 : f32
    %10 = vector.broadcast %cst_3 : f32 to vector<128x1xf32>
    %11 = arith.divf %9, %10 : vector<128x1xf32>
    %12 = vector.broadcast %4 : vector<128x1xf32> to vector<128x32xf32>
    %13 = arith.subf %0, %12 : vector<128x32xf32>
    %cst_4 = arith.constant 9.99999974E-6 : f32
    %14 = vector.broadcast %cst_4 : f32 to vector<128x1xf32>
    %15 = arith.addf %11, %14 : vector<128x1xf32>
    %16 = math.rsqrt %15 : vector<128x1xf32>
    %17 = vector.broadcast %16 : vector<128x1xf32> to vector<128x32xf32>
    %18 = arith.mulf %13, %17 : vector<128x32xf32>
    %c0_5 = arith.constant 0 : index
    %c0_6 = arith.constant 0 : index
    %19 = vector.load %arg2[%c0_5, %c0_6] : memref<1x32xf32, #tpu.memory_space<vmem>>, vector<1x32xf32>
    %20 = vector.broadcast %19 : vector<1x32xf32> to vector<128x32xf32>
    %21 = arith.mulf %18, %20 : vector<128x32xf32>
    %c0_7 = arith.constant 0 : index
    %c0_8 = arith.constant 0 : index
    %22 = vector.load %arg3[%c0_7, %c0_8] : memref<1x32xf32, #tpu.memory_space<vmem>>, vector<1x32xf32>
    %23 = vector.broadcast %22 : vector<1x32xf32> to vector<128x32xf32>
    %24 = arith.addf %21, %23 : vector<128x32xf32>
    %c0_9 = arith.constant 0 : index
    %c0_10 = arith.constant 0 : index
    %25 = vector.load %arg4[%c0_9, %c0_10] : memref<128x32xf32, #tpu.memory_space<vmem>>, vector<128x32xf32>
    tpu.vector_store %arg4[%c0_9, %c0_10], %24 {strides = array<i32>} : memref<128x32xf32, #tpu.memory_space<vmem>>, vector<128x32xf32>,
    return
  }
  func.func @transform_0(%arg0: i32) -> (i32, i32) {
    %c0_i32 = arith.constant 0 : i32
    %c0_i32_0 = arith.constant 0 : i32
    return %arg0, %c0_i32 : i32, i32
  }
  func.func @transform_1(%arg0: i32) -> (i32, i32) {
    %c0_i32 = arith.constant 0 : i32
    %c0_i32_0 = arith.constant 0 : i32
    %c0_i32_1 = arith.constant 0 : i32
    return %c0_i32, %c0_i32_0 : i32, i32
  }
  func.func @transform_2(%arg0: i32) -> (i32, i32) {
    %c0_i32 = arith.constant 0 : i32
    %c0_i32_0 = arith.constant 0 : i32
    %c0_i32_1 = arith.constant 0 : i32
    return %c0_i32, %c0_i32_0 : i32, i32
  }
  func.func @transform_3(%arg0: i32) -> (i32, i32) {
    %c0_i32 = arith.constant 0 : i32
    %c0_i32_0 = arith.constant 0 : i32
    return %arg0, %c0_i32 : i32, i32
  }
}

</mosaic_0001>

<bundles_post_ra>
// kernel: tpu_custom_call.1
= control target key start
LH: loop header
LB: loop body
LE: loop exit
PB: predicated region body
PF: predicated region fallthrough
CT: control target
= control target key end

     0   :  { %vm30_vm0 = vcmask 261120   ;;  %s666_s0 = inlined_call_operand.vmem [shape: f32[128,32], index: 0, kind: input, shape index: {}]   ;;  %s667_s1 = inlined_call_operand.vmem [shape: f32[1,32], index: 1, kind: input, shape index: {}]   ;;  %s668_s2 = inlined_call_operand.vmem [shape: f32[1,32], index: 2, kind: input, shape index: {}]   ;;  %s669_s3 = inlined_call_operand.vmem [shape: f32[128,32], index: 3, kind: output, shape index: {}]  }
   0x1   :  { %v14_v0 = vld [vmem:[%s666_s0] sm:$0xff]  ;;  %v16_v1 = vld [vmem:[%s666_s0 + $0x10] sm:$0xff]  ;;  %v15_v2 = vld [vmem:[%s666_s0 + $0x8] sm:$0xff] }
   0x2   :  { %v31_v3 = vsel %vm30_vm0, %v14_v0, 0.0  ;;  %v37_v4 = vsel %vm30_vm0, %v16_v1, 0.0  ;;  %v17_v5 = vld [vmem:[%s666_s0 + $0x18] sm:$0xff]  ;;  %v34_v6 = vsel %vm30_vm0, %v15_v2, 0.0  ;;  %v18_v8 = vld [vmem:[%s666_s0 + $0x20] sm:$0xff]  ;;  %v19_v9 = vld [vmem:[%s666_s0 + $0x28] sm:$0xff] }
   0x3   :  { %32 = vadd.xlane.f32.xlu0 %v31_v3  ;;  %38 = vadd.xlane.f32.xlu1 %v37_v4  ;;  %v40_v7 = vsel %vm30_vm0, %v17_v5, 0.0  ;;  %v43_v10 = vsel %vm30_vm0, %v18_v8, 0.0  ;;  %v46_v11 = vsel %vm30_vm0, %v19_v9, 0.0  ;;  %v387_v12 = vld [vmem:[%s666_s0 + $0x30] sm:$0xff]  ;;  %v392_v13 = vld [vmem:[%s666_s0 + $0x38] sm:$0xff]  ;;  %v401_v16 = vld [vmem:[%s666_s0 + $0x40] sm:$0xff] }
   0x4   :  { %v49_v14 = vsel %vm30_vm0, %v387_v12, 0.0  ;;  %v52_v15 = vsel %vm30_vm0, %v392_v13, 0.0  ;;  %v406_v17 = vld [vmem:[%s666_s0 + $0x48] sm:$0xff]  ;;  %v55_v18 = vsel %vm30_vm0, %v401_v16, 0.0  ;;  %v415_v20 = vld [vmem:[%s666_s0 + $0x50] sm:$0xff]  ;;  %v420_v21 = vld [vmem:[%s666_s0 + $0x58] sm:$0xff] }
   0x5   :  { %v58_v19 = vsel %vm30_vm0, %v406_v17, 0.0  ;;  %v61_v22 = vsel %vm30_vm0, %v415_v20, 0.0  ;;  %v64_v23 = vsel %vm30_vm0, %v420_v21, 0.0  ;;  %v429_v24 = vld [vmem:[%s666_s0 + $0x60] sm:$0xff]  ;;  %v434_v25 = vld [vmem:[%s666_s0 + $0x68] sm:$0xff]  ;;  %v443_v28 = vld [vmem:[%s666_s0 + $0x70] sm:$0xff] }
   0x6   :  { %v67_v26 = vsel %vm30_vm0, %v429_v24, 0.0  ;;  %v70_v27 = vsel %vm30_vm0, %v434_v25, 0.0  ;;  %v448_v29 = vld [vmem:[%s666_s0 + $0x78] sm:$0xff]  ;;  %v73_v30 = vsel %vm30_vm0, %v443_v28, 0.0 }
   0x7   :  { %35 = vadd.xlane.f32.xlu0 %v34_v6  ;;  %41 = vadd.xlane.f32.xlu1 %v40_v7  ;;  %v76_v31 = vsel %vm30_vm0, %v448_v29, 0.0 }
   0xb   :  { %44 = vadd.xlane.f32.xlu0 %v43_v10  ;;  %47 = vadd.xlane.f32.xlu1 %v46_v11 }
   0xf   :  { %50 = vadd.xlane.f32.xlu0 %v49_v14  ;;  %53 = vadd.xlane.f32.xlu1 %v52_v15 }
  0x13   :  { %56 = vadd.xlane.f32.xlu0 %v55_v18  ;;  %59 = vadd.xlane.f32.xlu1 %v58_v19 }
  0x17   :  { %62 = vadd.xlane.f32.xlu0 %v61_v22  ;;  %65 = vadd.xlane.f32.xlu1 %v64_v23 }
  0x1b   :  { %68 = vadd.xlane.f32.xlu0 %v67_v26  ;;  %71 = vadd.xlane.f32.xlu1 %v70_v27 }
  0x1f   :  { %74 = vadd.xlane.f32.xlu0 %v73_v30  ;;  %77 = vadd.xlane.f32.xlu1 %v76_v31 }
  0x8c   :  { %v33_v32 = vpop.xlane.xlu0 %32  ;;  %v39_v33 = vpop.xlane.xlu1 %38 }
  0x8d   :  { %v80_v34 = vmul.f32 0.03125, %v33_v32  ;;  %v82_v35 = vmul.f32 0.03125, %v39_v33 }
  0x8f   :  { %v454_v36 = vsub.f32 %v14_v0, %v80_v34  ;;  %v456_v37 = vsub.f32 %v16_v1, %v82_v35 }
  0x90   :  { %v36_v38 = vpop.xlane.xlu0 %35  ;;  %v42_v39 = vpop.xlane.xlu1 %41 }
  0x91   :  { %v81_v40 = vmul.f32 0.03125, %v36_v38  ;;  %v83_v41 = vmul.f32 0.03125, %v42_v39  ;;  %v112_v42 = vmul.f32 %v454_v36, %v454_v36  ;;  %v114_v43 = vmul.f32 %v456_v37, %v456_v37 }
  0x93   :  { %v462_v44 = vsub.f32 %v15_v2, %v81_v40  ;;  %v464_v45 = vsub.f32 %v17_v5, %v83_v41  ;;  %v128_v46 = vsel %vm30_vm0, %v112_v42, 0.0  ;;  %v134_v49 = vsel %vm30_vm0, %v114_v43, 0.0 }
  0x94   :  { %129 = vadd.xlane.f32.xlu0 %v128_v46  ;;  %v45_v47 = vpop.xlane.xlu0 %44  ;;  %v48_v48 = vpop.xlane.xlu1 %47 }
  0x95   :  { %v84_v50 = vmul.f32 0.03125, %v45_v47  ;;  %v85_v51 = vmul.f32 0.03125, %v48_v48  ;;  %v113_v52 = vmul.f32 %v462_v44, %v462_v44  ;;  %v115_v53 = vmul.f32 %v464_v45, %v464_v45 }
  0x97   :  { %v472_v54 = vsub.f32 %v18_v8, %v84_v50  ;;  %v474_v55 = vsub.f32 %v19_v9, %v85_v51  ;;  %v131_v56 = vsel %vm30_vm0, %v113_v52, 0.0  ;;  %v137_v59 = vsel %vm30_vm0, %v115_v53, 0.0 }
  0x98   :  { %135 = vadd.xlane.f32.xlu0 %v134_v49  ;;  %132 = vadd.xlane.f32.xlu1 %v131_v56  ;;  %v51_v57 = vpop.xlane.xlu0 %50  ;;  %v54_v58 = vpop.xlane.xlu1 %53 }
  0x99   :  { %v86_v60 = vmul.f32 0.03125, %v51_v57  ;;  %v87_v61 = vmul.f32 0.03125, %v54_v58  ;;  %v116_v62 = vmul.f32 %v472_v54, %v472_v54  ;;  %v117_v63 = vmul.f32 %v474_v55, %v474_v55 }
  0x9b   :  { %v483_v0 = vsub.f32 %v387_v12, %v86_v60  ;;  %v486_v1 = vsub.f32 %v392_v13, %v87_v61  ;;  %v140_v2 = vsel %vm30_vm0, %v116_v62, 0.0  ;;  %v143_v5 = vsel %vm30_vm0, %v117_v63, 0.0 }
  0x9c   :  { %138 = vadd.xlane.f32.xlu1 %v137_v59  ;;  %141 = vadd.xlane.f32.xlu0 %v140_v2  ;;  %v57_v3 = vpop.xlane.xlu0 %56  ;;  %v60_v4 = vpop.xlane.xlu1 %59 }
  0x9d   :  { %v88_v6 = vmul.f32 0.03125, %v57_v3  ;;  %v89_v7 = vmul.f32 0.03125, %v60_v4  ;;  %v118_v8 = vmul.f32 %v483_v0, %v483_v0  ;;  %v119_v9 = vmul.f32 %v486_v1, %v486_v1 }
  0x9f   :  { %v495_v10 = vsub.f32 %v401_v16, %v88_v6  ;;  %v498_v11 = vsub.f32 %v406_v17, %v89_v7  ;;  %v146_v12 = vsel %vm30_vm0, %v118_v8, 0.0  ;;  %v149_v15 = vsel %vm30_vm0, %v119_v9, 0.0 }
  0xa0   :  { %144 = vadd.xlane.f32.xlu1 %v143_v5  ;;  %147 = vadd.xlane.f32.xlu0 %v146_v12  ;;  %v63_v13 = vpop.xlane.xlu0 %62  ;;  %v66_v14 = vpop.xlane.xlu1 %65 }
  0xa1   :  { %v90_v18 = vmul.f32 0.03125, %v63_v13  ;;  %v91_v19 = vmul.f32 0.03125, %v66_v14  ;;  %v120_v22 = vmul.f32 %v495_v10, %v495_v10  ;;  %v121_v16 = vmul.f32 %v498_v11, %v498_v11 }
  0xa3   :  { %v507_v23 = vsub.f32 %v415_v20, %v90_v18  ;;  %v510_v17 = vsub.f32 %v420_v21, %v91_v19  ;;  %v152_v26 = vsel %vm30_vm0, %v120_v22, 0.0  ;;  %v155_v31 = vsel %vm30_vm0, %v121_v16, 0.0 }
  0xa4   :  { %150 = vadd.xlane.f32.xlu1 %v149_v15  ;;  %153 = vadd.xlane.f32.xlu0 %v152_v26  ;;  %v69_v27 = vpop.xlane.xlu0 %68  ;;  %v72_v30 = vpop.xlane.xlu1 %71  ;;  %v547_v26 = vld [vmem:[%s667_s1] ss:$0 sm:$0xff] }
  0xa5   :  { %v92_v32 = vmul.f32 0.03125, %v69_v27  ;;  %v93_v33 = vmul.f32 0.03125, %v72_v30  ;;  %v122_v34 = vmul.f32 %v507_v23, %v507_v23  ;;  %v123_v20 = vmul.f32 %v510_v17, %v510_v17 }
  0xa7   :  { %v519_v35 = vsub.f32 %v429_v24, %v92_v32  ;;  %v522_v21 = vsub.f32 %v434_v25, %v93_v33  ;;  %v158_v38 = vsel %vm30_vm0, %v122_v34, 0.0  ;;  %v161_v41 = vsel %vm30_vm0, %v123_v20, 0.0  ;;  %v553_v32 = vld [vmem:[%s668_s2] ss:$0 sm:$0xff] }
  0xa8   :  { %156 = vadd.xlane.f32.xlu1 %v155_v31  ;;  %159 = vadd.xlane.f32.xlu0 %v158_v38  ;;  %v75_v39 = vpop.xlane.xlu0 %74  ;;  %v78_v40 = vpop.xlane.xlu1 %77 }
  0xa9   :  { %v94_v42 = vmul.f32 0.03125, %v75_v39  ;;  %v95_v43 = vmul.f32 0.03125, %v78_v40  ;;  %v124_v46 = vmul.f32 %v519_v35, %v519_v35  ;;  %v125_v24 = vmul.f32 %v522_v21, %v522_v21 }
  0xab   :  { %v531_v47 = vsub.f32 %v443_v28, %v94_v42  ;;  %v534_v25 = vsub.f32 %v448_v29, %v95_v43  ;;  %v164_v48 = vsel %vm30_vm0, %v124_v46, 0.0  ;;  %v167_v49 = vsel %vm30_vm0, %v125_v24, 0.0 }
  0xac   :  { %162 = vadd.xlane.f32.xlu1 %v161_v41  ;;  %165 = vadd.xlane.f32.xlu0 %v164_v48 }
  0xad   :  { %v126_v50 = vmul.f32 %v531_v47, %v531_v47  ;;  %v127_v51 = vmul.f32 %v534_v25, %v534_v25 }
  0xaf   :  { %v170_v52 = vsel %vm30_vm0, %v126_v50, 0.0  ;;  %v173_v28 = vsel %vm30_vm0, %v127_v51, 0.0 }
  0xb0   :  { %168 = vadd.xlane.f32.xlu1 %v167_v49  ;;  %171 = vadd.xlane.f32.xlu0 %v170_v52 }
  0xb4   :  { %174 = vadd.xlane.f32.xlu1 %v173_v28 }
 0x11d   :  { %v130_v29 = vpop.xlane.xlu0 %129 }
 0x11e   :  { %v176_v53 = vmul.f32 0.03125, %v130_v29 }
 0x120   :  { %v192_v56 = vadd.f32 1e-05, %v176_v53 }
 0x121   :  { %v133_v57 = vpop.xlane.xlu1 %132  ;;  %v136_v58 = vpop.xlane.xlu0 %135 }
 0x122   :  { %308 = vrsqrt.f32 %v192_v56  ;;  %v177_v59 = vmul.f32 0.03125, %v133_v57  ;;  %v178_v60 = vmul.f32 0.03125, %v136_v58 }
 0x124   :  { %v193_v61 = vadd.f32 1e-05, %v177_v59  ;;  %v194_v62 = vadd.f32 1e-05, %v178_v60 }
 0x125   :  { %v139_v63 = vpop.xlane.xlu1 %138  ;;  %v142_v2 = vpop.xlane.xlu0 %141 }
 0x126   :  { %310 = vrsqrt.f32 %v193_v61  ;;  %v179_v3 = vmul.f32 0.03125, %v139_v63  ;;  %v180_v4 = vmul.f32 0.03125, %v142_v2 }
 0x127   :  { %312 = vrsqrt.f32 %v194_v62 }
 0x128   :  { %v195_v5 = vadd.f32 1e-05, %v179_v3  ;;  %v196_v6 = vadd.f32 1e-05, %v180_v4 }
 0x129   :  { %v145_v7 = vpop.xlane.xlu1 %144  ;;  %v148_v8 = vpop.xlane.xlu0 %147 }
 0x12a   :  { %314 = vrsqrt.f32 %v195_v5  ;;  %v181_v9 = vmul.f32 0.03125, %v145_v7  ;;  %v182_v12 = vmul.f32 0.03125, %v148_v8 }
 0x12b   :  { %316 = vrsqrt.f32 %v196_v6 }
 0x12c   :  { %v197_v13 = vadd.f32 1e-05, %v181_v9  ;;  %v198_v14 = vadd.f32 1e-05, %v182_v12 }
 0x12d   :  { %v151_v15 = vpop.xlane.xlu1 %150  ;;  %v154_v18 = vpop.xlane.xlu0 %153 }
 0x12e   :  { %318 = vrsqrt.f32 %v197_v13  ;;  %v183_v19 = vmul.f32 0.03125, %v151_v15  ;;  %v184_v22 = vmul.f32 0.03125, %v154_v18 }
 0x12f   :  { %v309_v16 = vpop.eup %308  ;;  %320 = vrsqrt.f32 %v198_v14 }
 0x130   :  { %v224_v27 = vmul.f32 %v309_v16, %v454_v36  ;;  %v199_v30 = vadd.f32 1e-05, %v183_v19  ;;  %v200_v31 = vadd.f32 1e-05, %v184_v22 }
 0x131   :  { %v157_v33 = vpop.xlane.xlu1 %156  ;;  %v160_v34 = vpop.xlane.xlu0 %159 }
 0x132   :  { %v247_v20 = vmul.f32 %v547_v26, %v224_v27  ;;  %322 = vrsqrt.f32 %v199_v30  ;;  %v185_v38 = vmul.f32 0.03125, %v157_v33  ;;  %v186_v39 = vmul.f32 0.03125, %v160_v34 }
 0x133   :  { %v311_v40 = vpop.eup %310  ;;  %324 = vrsqrt.f32 %v200_v31 }
 0x134   :  { %v313_v41 = vpop.eup %312  ;;  %v270_v42 = vadd.f32 %v553_v32, %v247_v20  ;;  %v225_v36 = vmul.f32 %v311_v40, %v462_v44  ;;  %v201_v43 = vadd.f32 1e-05, %v185_v38  ;;  %v202_v46 = vadd.f32 1e-05, %v186_v39 }
 0x135   :  { %v226_v24 = vmul.f32 %v313_v41, %v456_v37  ;;  %v163_v48 = vpop.xlane.xlu1 %162  ;;  %v166_v49 = vpop.xlane.xlu0 %165 }
 0x136   :  { %286 = vst.msk [vmem:[%s669_s3] sm:$0xff] %vm30_vm0, %v270_v42  ;;  %v248_v50 = vmul.f32 %v547_v26, %v225_v36  ;;  %326 = vrsqrt.f32 %v201_v43  ;;  %v187_v51 = vmul.f32 0.03125, %v163_v48  ;;  %v188_v52 = vmul.f32 0.03125, %v166_v49 }
 0x137   :  { %v315_v28 = vpop.eup %314  ;;  %v249_v29 = vmul.f32 %v547_v26, %v226_v24  ;;  %328 = vrsqrt.f32 %v202_v46 }
 0x138   :  { %v317_v44 = vpop.eup %316  ;;  %v271_v53 = vadd.f32 %v553_v32, %v248_v50  ;;  %v227_v37 = vmul.f32 %v315_v28, %v464_v45  ;;  %v203_v56 = vadd.f32 1e-05, %v187_v51  ;;  %v204_v57 = vadd.f32 1e-05, %v188_v52 }
 0x139   :  { %v272_v58 = vadd.f32 %v553_v32, %v249_v29  ;;  %v228_v59 = vmul.f32 %v317_v44, %v472_v54  ;;  %v169_v60 = vpop.xlane.xlu1 %168  ;;  %v172_v61 = vpop.xlane.xlu0 %171 }
 0x13a   :  { %287 = vst.msk [vmem:[%s669_s3 + $0x8] sm:$0xff] %vm30_vm0, %v271_v53  ;;  %v250_v62 = vmul.f32 %v547_v26, %v227_v37  ;;  %330 = vrsqrt.f32 %v203_v56  ;;  %v189_v63 = vmul.f32 0.03125, %v169_v60  ;;  %v190_v2 = vmul.f32 0.03125, %v172_v61 }
 0x13b   :  { %v319_v3 = vpop.eup %318  ;;  %288 = vst.msk [vmem:[%s669_s3 + $0x10] sm:$0xff] %vm30_vm0, %v272_v58  ;;  %v251_v45 = vmul.f32 %v547_v26, %v228_v59  ;;  %332 = vrsqrt.f32 %v204_v57 }
 0x13c   :  { %v321_v54 = vpop.eup %320  ;;  %v273_v4 = vadd.f32 %v553_v32, %v250_v62  ;;  %v229_v5 = vmul.f32 %v319_v3, %v474_v55  ;;  %v205_v6 = vadd.f32 1e-05, %v189_v63  ;;  %v206_v7 = vadd.f32 1e-05, %v190_v2 }
 0x13d   :  { %v274_v8 = vadd.f32 %v553_v32, %v251_v45  ;;  %v230_v9 = vmul.f32 %v321_v54, %v483_v0  ;;  %v175_v12 = vpop.xlane.xlu1 %174 }
 0x13e   :  { %289 = vst.msk [vmem:[%s669_s3 + $0x18] sm:$0xff] %vm30_vm0, %v273_v4  ;;  %v252_v13 = vmul.f32 %v547_v26, %v229_v5  ;;  %334 = vrsqrt.f32 %v205_v6  ;;  %v191_v14 = vmul.f32 0.03125, %v175_v12 }
 0x13f   :  { %v323_v15 = vpop.eup %322  ;;  %290 = vst.msk [vmem:[%s669_s3 + $0x20] sm:$0xff] %vm30_vm0, %v274_v8  ;;  %v253_v55 = vmul.f32 %v547_v26, %v230_v9  ;;  %336 = vrsqrt.f32 %v206_v7 }
 0x140   :  { %v325_v0 = vpop.eup %324  ;;  %v275_v18 = vadd.f32 %v553_v32, %v252_v13  ;;  %v231_v19 = vmul.f32 %v323_v15, %v486_v1  ;;  %v207_v22 = vadd.f32 1e-05, %v191_v14 }
 0x141   :  { %v276_v16 = vadd.f32 %v553_v32, %v253_v55  ;;  %v232_v27 = vmul.f32 %v325_v0, %v495_v10 }
 0x142   :  { %291 = vst.msk [vmem:[%s669_s3 + $0x28] sm:$0xff] %vm30_vm0, %v275_v18  ;;  %v254_v30 = vmul.f32 %v547_v26, %v231_v19  ;;  %338 = vrsqrt.f32 %v207_v22 }
 0x143   :  { %v327_v31 = vpop.eup %326  ;;  %292 = vst.msk [vmem:[%s669_s3 + $0x30] sm:$0xff] %vm30_vm0, %v276_v16  ;;  %v255_v1 = vmul.f32 %v547_v26, %v232_v27 }
 0x144   :  { %v329_v33 = vpop.eup %328  ;;  %v277_v34 = vadd.f32 %v553_v32, %v254_v30  ;;  %v233_v10 = vmul.f32 %v327_v31, %v498_v11 }
 0x145   :  { %v278_v20 = vadd.f32 %v553_v32, %v255_v1  ;;  %v234_v38 = vmul.f32 %v329_v33, %v507_v23 }
 0x146   :  { %293 = vst.msk [vmem:[%s669_s3 + $0x38] sm:$0xff] %vm30_vm0, %v277_v34  ;;  %v256_v39 = vmul.f32 %v547_v26, %v233_v10 }
 0x147   :  { %v331_v40 = vpop.eup %330  ;;  %294 = vst.msk [vmem:[%s669_s3 + $0x40] sm:$0xff] %vm30_vm0, %v278_v20  ;;  %v257_v41 = vmul.f32 %v547_v26, %v234_v38 }
 0x148   :  { %v333_v11 = vpop.eup %332  ;;  %v279_v42 = vadd.f32 %v553_v32, %v256_v39  ;;  %v235_v23 = vmul.f32 %v331_v40, %v510_v17 }
 0x149   :  { %v280_v36 = vadd.f32 %v553_v32, %v257_v41  ;;  %v236_v43 = vmul.f32 %v333_v11, %v519_v35 }
 0x14a   :  { %295 = vst.msk [vmem:[%s669_s3 + $0x48] sm:$0xff] %vm30_vm0, %v279_v42  ;;  %v258_v46 = vmul.f32 %v547_v26, %v235_v23 }
 0x14b   :  { %v335_v24 = vpop.eup %334  ;;  %296 = vst.msk [vmem:[%s669_s3 + $0x50] sm:$0xff] %vm30_vm0, %v280_v36  ;;  %v259_v48 = vmul.f32 %v547_v26, %v236_v43 }
 0x14c   :  { %v337_v17 = vpop.eup %336  ;;  %v281_v49 = vadd.f32 %v553_v32, %v258_v46  ;;  %v237_v35 = vmul.f32 %v335_v24, %v522_v21 }
 0x14d   :  { %v282_v50 = vadd.f32 %v553_v32, %v259_v48  ;;  %v238_v51 = vmul.f32 %v337_v17, %v531_v47 }
 0x14e   :  { %297 = vst.msk [vmem:[%s669_s3 + $0x58] sm:$0xff] %vm30_vm0, %v281_v49  ;;  %v260_v52 = vmul.f32 %v547_v26, %v237_v35 }
 0x14f   :  { %v339_v28 = vpop.eup %338  ;;  %298 = vst.msk [vmem:[%s669_s3 + $0x60] sm:$0xff] %vm30_vm0, %v282_v50  ;;  %v261_v29 = vmul.f32 %v547_v26, %v238_v51 }
 0x150   :  { %v283_v21 = vadd.f32 %v553_v32, %v260_v52  ;;  %v239_v44 = vmul.f32 %v339_v28, %v534_v25 }
 0x151   :  { %v284_v47 = vadd.f32 %v553_v32, %v261_v29 }
 0x152   :  { %299 = vst.msk [vmem:[%s669_s3 + $0x68] sm:$0xff] %vm30_vm0, %v283_v21  ;;  %v262_v53 = vmul.f32 %v547_v26, %v239_v44 }
 0x153   :  { %300 = vst.msk [vmem:[%s669_s3 + $0x70] sm:$0xff] %vm30_vm0, %v284_v47 }
 0x154   :  { %v285_v37 = vadd.f32 %v553_v32, %v262_v53 }
 0x156   :  { %301 = vst.msk [vmem:[%s669_s3 + $0x78] sm:$0xff] %vm30_vm0, %v285_v37 }

</bundles_post_ra>
